<compile_context>
chip_gen: v6e
topology: v6e:2x2x1
jax: 0.10.0
libtpu: 0.0.40
codegen_flags: <defaults>
</compile_context>

<pallas_src>
import numpy as np
import jax
import jax.numpy as jnp
from jax import lax
from jax.experimental import pallas as pl
from jax.experimental.pallas import tpu as pltpu

# ---------------- small synthetic configuration ----------------
B = 2                          # batch (queries)
K_H = 8
K_W = 4
H_DIM = K_H * K_W              # 32  (h_dim, asserted k_h*k_w == h_dim)
KER = 3                        # ker_sz
C_OUT = 4                      # out_channels
H_OUT = 2 * K_H - KER + 1      # 14  (flat_sz_h)
W_OUT = K_W - KER + 1          # 2   (flat_sz_w)
M = H_OUT * W_OUT              # 28
FLAT_SZ = H_OUT * W_OUT * C_OUT    # 112
FLAT_PAD = 128                 # FLAT_SZ padded to a full lane width
N_ENT = 2048                   # number of entities (all_ent rows)
BN_EPS = 1e-5


def _bn_affine(gamma, beta, mean, var):
    a = gamma / jnp.sqrt(var + BN_EPS)
    return a, beta - mean * a


def _build_im2col_onehot():
    # onehot[m, t, k] == 1  iff  tap t of conv output position m reads hr[:, k],
    # where hr = concat([head, rel], axis=1) and the image is torch's
    # stack/transpose/reshape interleave of head and rel (even flat index ->
    # head, odd -> rel).
    oh = np.zeros((M, KER * KER, 2 * H_DIM), dtype=np.float32)
    for i in range(H_OUT):
        for j in range(W_OUT):
            m = i * W_OUT + j
            for p in range(KER):
                for q in range(KER):
                    t = p * KER + q
                    f = (i + p) * K_W + (j + q)        # flat index in 16x4 image
                    k = (f // 2) + H_DIM * (f % 2)
                    oh[m, t, k] = 1.0
    return oh


_IM2COL_ONEHOT = _build_im2col_onehot()    # static structural constant


def _choose_entity_tile(n_pad, cap=8192):
    """Lane-dense entity tile.

    Largest 512-multiple divisor of n_pad that is <= cap, preferring an even
    number (>= 2) of grid steps so the "parallel" entity axis shards across
    both v7x TensorCores.  cap=8192 keeps the double-buffered f32 tile
    (~2 MiB) + constants well under v5e's 16 MiB scoped-VMEM default (and
    v7x's 32 MiB), while amortizing the ~600-cycle per-grid-step overhead.
    """
    if n_pad <= 512:
        return n_pad
    best_even, best_any = None, None
    d = 512
    while d <= min(cap, n_pad):
        if n_pad % d == 0:
            best_any = d
            if (n_pad // d) % 2 == 0:
                best_even = d
        d += 512
    if best_even is not None:
        return best_even
    if best_any is not None:
        return best_any
    return n_pad


def prepare_entity_table(all_ent, dtype=jnp.bfloat16):
    """Prepare the entity table ONCE and cache it across forward calls.

    Transposes the (n_ent, h_dim) table into the lane-dense (h_dim, n_pad)
    layout the kernel streams, pads the entity axis to a lane-friendly
    multiple, and casts to the streaming dtype.  bf16 halves the only HBM
    traffic that scales with n_ent (MXU accumulates in f32 on v5e/v6e/v7x);
    pass jnp.float32 for a full-precision path.
    """
    n_ent, h_dim = all_ent.shape
    assert h_dim == H_DIM
    granule = 1024 if n_ent >= 1024 else 128
    n_pad = -(-n_ent // granule) * granule
    aet = jnp.asarray(all_ent, dtype).T                # (H_DIM, n_ent)
    if n_pad != n_ent:
        aet = jnp.pad(aet, ((0, 0), (0, n_pad - n_ent)))
    return aet


# ------- fused kernel: conv+bn1+relu -> fc+bn2+relu -> score+sigmoid -------
def conve_kernel(hr_ref, wc_ref, bc_ref, wfc_ref, bfc_ref, aet_ref, out_ref):
    # conv (with bn0/bn1 folded into weight+bias) as one MXU matmul, then relu.
    z = jnp.dot(hr_ref[...], wc_ref[...], preferred_element_type=jnp.float32)
    act = jnp.maximum(z + bc_ref[...], 0.0)                     # (B_pad, FLAT_PAD)
    # fc (with bn2 folded), relu.  Tile-independent: safe under "parallel";
    # amortized by the large entity tiles.
    f = jnp.dot(act, wfc_ref[...], preferred_element_type=jnp.float32)
    feat = jnp.maximum(f + bfc_ref[...], 0.0)                   # (B_pad, H_DIM)
    # score matmul over this entity tile (bf16 or f32 stream, f32 acc) + sigmoid.
    s = jnp.dot(feat.astype(aet_ref.dtype), aet_ref[...],
                preferred_element_type=jnp.float32)
    out_ref[...] = jax.nn.sigmoid(s)


# ---------------- wrapper ----------------
def conve_forward(head, rel, aet, params, *, n_ent=None):
    """Fused ConvE forward.  `aet` is the prepared (H_DIM, n_pad) entity table
    from `prepare_entity_table` (cached across calls)."""
    b = head.shape[0]
    n_pad = aet.shape[1]
    if n_ent is None:
        n_ent = n_pad
    tn = _choose_entity_tile(n_pad)
    b_pad = max(8, -(-b // 8) * 8)          # sublane-dense output stores

    w_conv = params["w_conv"]     # (C_OUT, 1, KER, KER)  -- torch Conv2d weight
    w_fc = params["w_fc"]         # (H_DIM, FLAT_SZ)      -- torch Linear weight

    a0, b0 = _bn_affine(*params["bn0"])   # scalars
    a1, b1 = _bn_affine(*params["bn1"])   # (C_OUT,)
    a2, b2 = _bn_affine(*params["bn2"])   # (H_DIM,)

    # ---- parameter-only constant folding (no data involved) ----
    # conv as a dense map of hr = [head, rel]; output column = c*M + i*W_OUT + j
    # (torch NCHW flatten order).
    w9 = w_conv.reshape(C_OUT, KER * KER)                        # (C, 9)
    w_conv_map = jnp.einsum("ct,mtk->kcm", w9, _IM2COL_ONEHOT)   # (64, C, M)
    w_conv_map = w_conv_map.reshape(2 * H_DIM, FLAT_SZ)
    # fold bn0 (input affine) and bn1 (output affine):
    #   bn1( conv(a0*x + b0) ) = (a0*a1_c) * conv(x) + (a1_c*b0*sum(w_c) + b1_c)
    # (valid only for padding='VALID': every tap reads a real pixel).
    a1_col = jnp.repeat(a1, M)                                   # (FLAT_SZ,)
    w_conv_eff = w_conv_map * (a0 * a1_col)[None, :]             # (64, FLAT_SZ)
    tap_sum = jnp.sum(w9, axis=1)                                # (C,)
    b_conv_eff = jnp.repeat(a1 * (b0 * tap_sum) + b1, M).reshape(1, FLAT_SZ)
    # fold bn2 into fc weight / bias
    w_fc_eff = w_fc.T * a2[None, :]                              # (FLAT_SZ, H_DIM)
    b_fc_eff = b2.reshape(1, H_DIM)
    # pad FLAT_SZ (112) -> 128 lanes with zeros (free at fold time; keeps the
    # conv/fc stage on unmasked full-lane vregs).
    w_conv_eff = jnp.pad(w_conv_eff, ((0, 0), (0, FLAT_PAD - FLAT_SZ)))
    b_conv_eff = jnp.pad(b_conv_eff, ((0, 0), (0, FLAT_PAD - FLAT_SZ)))
    w_fc_eff = jnp.pad(w_fc_eff, ((0, FLAT_PAD - FLAT_SZ), (0, 0)))

    # ---- data-path input (pad batch to 8 sublanes) ----
    hr = jnp.concatenate([head, rel], axis=1)                    # (B, 2*H_DIM)
    if b_pad != b:
        hr = jnp.pad(hr, ((0, b_pad - b), (0, 0)))

    out = pl.pallas_call(
        conve_kernel,
        out_shape=jax.ShapeDtypeStruct((b_pad, n_pad), jnp.float32),
        grid=(n_pad // tn,),
        in_specs=[
            pl.BlockSpec((b_pad, 2 * H_DIM), lambda j: (0, 0)),    # hr
            pl.BlockSpec((2 * H_DIM, FLAT_PAD), lambda j: (0, 0)), # folded conv weight
            pl.BlockSpec((1, FLAT_PAD), lambda j: (0, 0)),         # folded conv bias
            pl.BlockSpec((FLAT_PAD, H_DIM), lambda j: (0, 0)),     # folded fc weight
            pl.BlockSpec((1, H_DIM), lambda j: (0, 0)),            # folded fc bias
            pl.BlockSpec((H_DIM, tn), lambda j: (0, j)),           # entity-table tile
        ],
        out_specs=pl.BlockSpec((b_pad, tn), lambda j: (0, j)),
        compiler_params=pltpu.CompilerParams(
            dimension_semantics=("parallel",)),   # shards entity tiles across TCs (v7x)
    )(hr, w_conv_eff, b_conv_eff, w_fc_eff, b_fc_eff, aet)
    return out[:b, :n_ent]


# ---------------- pure-JAX reference (mirrors the torch forward) ----------------
def conve_reference(head, rel, all_ent, params):
    w_conv = params["w_conv"]
    w_fc = params["w_fc"]
    a0, b0 = _bn_affine(*params["bn0"])
    a1, b1 = _bn_affine(*params["bn1"])
    a2, b2 = _bn_affine(*params["bn2"])

    b = head.shape[0]
    c = jnp.stack([head, rel], axis=1)
    c = jnp.transpose(c, (0, 2, 1)).reshape(b, 1, 2 * K_H, K_W)
    x = a0 * c + b0
    x = lax.conv_general_dilated(
        x, w_conv, window_strides=(1, 1), padding="VALID",
        dimension_numbers=("NCHW", "OIHW", "NCHW"))
    x = x * a1.reshape(1, C_OUT, 1, 1) + b1.reshape(1, C_OUT, 1, 1)
    x = jnp.maximum(x, 0.0)
    x = x.reshape(b, FLAT_SZ)
    x = x @ w_fc.T
    x = x * a2 + b2
    x = jnp.maximum(x, 0.0)
    x = x @ all_ent.T
    return jax.nn.sigmoid(x)


if __name__ == "__main__":
    key = jax.random.PRNGKey(0)
    ks = jax.random.split(key, 12)
    head = jax.random.normal(ks[0], (B, H_DIM), jnp.float32)
    rel = jax.random.normal(ks[1], (B, H_DIM), jnp.float32)
    all_ent = jax.random.normal(ks[2], (N_ENT, H_DIM), jnp.float32)

    params = {
        "w_conv": jax.random.normal(ks[3], (C_OUT, 1, KER, KER), jnp.float32) * 0.1,
        "w_fc": jax.random.normal(ks[4], (H_DIM, FLAT_SZ), jnp.float32) * 0.1,
        # (gamma, beta, running_mean, running_var) per BatchNorm, deterministic
        "bn0": (jnp.float32(1.2), jnp.float32(0.1), jnp.float32(0.05), jnp.float32(0.9)),
        "bn1": (
            jax.random.uniform(ks[5], (C_OUT,), jnp.float32, 0.5, 1.5),
            jax.random.normal(ks[6], (C_OUT,), jnp.float32) * 0.1,
            jax.random.normal(ks[7], (C_OUT,), jnp.float32) * 0.1,
            jax.random.uniform(ks[8], (C_OUT,), jnp.float32, 0.5, 1.5),
        ),
        "bn2": (
            jax.random.uniform(ks[9], (H_DIM,), jnp.float32, 0.5, 1.5),
            jax.random.normal(ks[10], (H_DIM,), jnp.float32) * 0.1,
            jax.random.normal(ks[11], (H_DIM,), jnp.float32) * 0.1,
            jnp.ones((H_DIM,), jnp.float32),
        ),
    }

    fwd = jax.jit(conve_forward, static_argnames=("n_ent",))
    ref = conve_reference(head, rel, all_ent, params)

    # --- f32 path: tight validation against the reference ---
    aet_f32 = prepare_entity_table(all_ent, jnp.float32)   # cached across calls
    out_f32 = jax.block_until_ready(fwd(head, rel, aet_f32, params, n_ent=N_ENT))
    assert out_f32.shape == (B, N_ENT), out_f32.shape
    err_f32 = float(jnp.max(jnp.abs(out_f32 - ref)))
    if err_f32 > 1e-3:
        raise AssertionError(f"f32 kernel/reference mismatch, max abs err = {err_f32}")

    # --- bf16 fast path (halves the scaling HBM stream); looser tolerance ---
    aet_bf16 = prepare_entity_table(all_ent, jnp.bfloat16)  # cached across calls
    out_bf16 = jax.block_until_ready(fwd(head, rel, aet_bf16, params, n_ent=N_ENT))
    assert out_bf16.shape == (B, N_ENT), out_bf16.shape
    err_bf16 = float(jnp.max(jnp.abs(out_bf16 - ref)))
    if err_bf16 > 2e-2:
        raise AssertionError(f"bf16 kernel/reference mismatch, max abs err = {err_bf16}")

    print("KERNEL_OK")
</pallas_src>

<mosaic_0001>
module attributes {stable_mosaic.version = 11 : i64} {
  func.func @conve_kernel(%arg0: i32, %arg1: memref<8x64xf32, #tpu.memory_space<vmem>>, %arg2: memref<64x128xf32, #tpu.memory_space<vmem>>, %arg3: memref<1x128xf32, #tpu.memory_space<vmem>>, %arg4: memref<128x32xf32, #tpu.memory_space<vmem>>, %arg5: memref<1x32xf32, #tpu.memory_space<vmem>>, %arg6: memref<32x1024xf32, #tpu.memory_space<vmem>>, %arg7: memref<8x1024xf32, #tpu.memory_space<vmem>>) attributes {dimension_semantics = [#tpu.dimension_semantics<parallel>], iteration_bounds = array<i64: 2>, scalar_prefetch = 0 : i64, scratch_operands = 0 : i64, tpu.core_type = #tpu.core_type<tc>, window_params = [{pipeline_mode = #tpu.pipeline_mode<synchronous>, transform_indices = @transform_0, window_bounds = array<i64: 8, 64>}, {pipeline_mode = #tpu.pipeline_mode<synchronous>, transform_indices = @transform_1, window_bounds = array<i64: 64, 128>}, {pipeline_mode = #tpu.pipeline_mode<synchronous>, transform_indices = @transform_2, window_bounds = array<i64: 1, 128>}, {pipeline_mode = #tpu.pipeline_mode<synchronous>, transform_indices = @transform_3, window_bounds = array<i64: 128, 32>}, {pipeline_mode = #tpu.pipeline_mode<synchronous>, transform_indices = @transform_4, window_bounds = array<i64: 1, 32>}, {transform_indices = @transform_5, window_bounds = array<i64: 32, 1024>}, {transform_indices = @transform_6, window_bounds = array<i64: 8, 1024>}]} {
    %c0 = arith.constant 0 : index
    %c0_0 = arith.constant 0 : index
    %0 = vector.load %arg1[%c0, %c0_0] : memref<8x64xf32, #tpu.memory_space<vmem>>, vector<8x64xf32>
    %c0_1 = arith.constant 0 : index
    %c0_2 = arith.constant 0 : index
    %1 = vector.load %arg2[%c0_1, %c0_2] : memref<64x128xf32, #tpu.memory_space<vmem>>, vector<64x128xf32>
    %cst = arith.constant dense<0.000000e+00> : vector<8x128xf32>
    %2 = tpu.matmul %0, %1, %cst {dimension_numbers = #tpu.dot_dimension_numbers<[1], [0], [0], [1], [0, 0, 1, 1], [], []>} : vector<8x64xf32>, vector<64x128xf32>, vector<8x128xf32> -> vector<8x128xf32>
    %c0_3 = arith.constant 0 : index
    %c0_4 = arith.constant 0 : index
    %3 = vector.load %arg3[%c0_3, %c0_4] : memref<1x128xf32, #tpu.memory_space<vmem>>, vector<1x128xf32>
    %4 = vector.broadcast %3 : vector<1x128xf32> to vector<8x128xf32>
    %5 = arith.addf %2, %4 : vector<8x128xf32>
    %cst_5 = arith.constant 0.000000e+00 : f32
    %6 = vector.broadcast %cst_5 : f32 to vector<8x128xf32>
    %7 = arith.maximumf %5, %6 : vector<8x128xf32>
    %c0_6 = arith.constant 0 : index
    %c0_7 = arith.constant 0 : index
    %8 = vector.load %arg4[%c0_6, %c0_7] : memref<128x32xf32, #tpu.memory_space<vmem>>, vector<128x32xf32>
    %cst_8 = arith.constant dense<0.000000e+00> : vector<8x32xf32>
    %9 = tpu.matmul %7, %8, %cst_8 {dimension_numbers = #tpu.dot_dimension_numbers<[1], [0], [0], [1], [0, 0, 1, 1], [], []>} : vector<8x128xf32>, vector<128x32xf32>, vector<8x32xf32> -> vector<8x32xf32>
    %c0_9 = arith.constant 0 : index
    %c0_10 = arith.constant 0 : index
    %10 = vector.load %arg5[%c0_9, %c0_10] : memref<1x32xf32, #tpu.memory_space<vmem>>, vector<1x32xf32>
    %11 = vector.broadcast %10 : vector<1x32xf32> to vector<8x32xf32>
    %12 = arith.addf %9, %11 : vector<8x32xf32>
    %cst_11 = arith.constant 0.000000e+00 : f32
    %13 = vector.broadcast %cst_11 : f32 to vector<8x32xf32>
    %14 = arith.maximumf %12, %13 : vector<8x32xf32>
    %c0_12 = arith.constant 0 : index
    %c0_13 = arith.constant 0 : index
    %15 = vector.load %arg6[%c0_12, %c0_13] : memref<32x1024xf32, #tpu.memory_space<vmem>>, vector<32x1024xf32>
    %cst_14 = arith.constant dense<0.000000e+00> : vector<8x1024xf32>
    %16 = tpu.matmul %14, %15, %cst_14 {dimension_numbers = #tpu.dot_dimension_numbers<[1], [0], [0], [1], [0, 0, 1, 1], [], []>} : vector<8x32xf32>, vector<32x1024xf32>, vector<8x1024xf32> -> vector<8x1024xf32>
    %17 = arith.negf %16 : vector<8x1024xf32>
    %18 = math.exp %17 : vector<8x1024xf32>
    %cst_15 = arith.constant 1.000000e+00 : f32
    %19 = vector.broadcast %cst_15 : f32 to vector<8x1024xf32>
    %20 = arith.addf %19, %18 : vector<8x1024xf32>
    %21 = arith.divf %19, %20 : vector<8x1024xf32>
    %c0_16 = arith.constant 0 : index
    %c0_17 = arith.constant 0 : index
    %22 = vector.load %arg7[%c0_16, %c0_17] : memref<8x1024xf32, #tpu.memory_space<vmem>>, vector<8x1024xf32>
    tpu.vector_store %arg7[%c0_16, %c0_17], %21 {strides = array<i32>} : memref<8x1024xf32, #tpu.memory_space<vmem>>, vector<8x1024xf32>,
    return
  }
  func.func @transform_0(%arg0: i32) -> (i32, i32) {
    %c0_i32 = arith.constant 0 : i32
    %c0_i32_0 = arith.constant 0 : i32
    %c0_i32_1 = arith.constant 0 : i32
    return %c0_i32, %c0_i32_0 : i32, i32
  }
  func.func @transform_1(%arg0: i32) -> (i32, i32) {
    %c0_i32 = arith.constant 0 : i32
    %c0_i32_0 = arith.constant 0 : i32
    %c0_i32_1 = arith.constant 0 : i32
    return %c0_i32, %c0_i32_0 : i32, i32
  }
  func.func @transform_2(%arg0: i32) -> (i32, i32) {
    %c0_i32 = arith.constant 0 : i32
    %c0_i32_0 = arith.constant 0 : i32
    %c0_i32_1 = arith.constant 0 : i32
    return %c0_i32, %c0_i32_0 : i32, i32
  }
  func.func @transform_3(%arg0: i32) -> (i32, i32) {
    %c0_i32 = arith.constant 0 : i32
    %c0_i32_0 = arith.constant 0 : i32
    %c0_i32_1 = arith.constant 0 : i32
    return %c0_i32, %c0_i32_0 : i32, i32
  }
  func.func @transform_4(%arg0: i32) -> (i32, i32) {
    %c0_i32 = arith.constant 0 : i32
    %c0_i32_0 = arith.constant 0 : i32
    %c0_i32_1 = arith.constant 0 : i32
    return %c0_i32, %c0_i32_0 : i32, i32
  }
  func.func @transform_5(%arg0: i32) -> (i32, i32) {
    %c0_i32 = arith.constant 0 : i32
    %c0_i32_0 = arith.constant 0 : i32
    return %c0_i32, %arg0 : i32, i32
  }
  func.func @transform_6(%arg0: i32) -> (i32, i32) {
    %c0_i32 = arith.constant 0 : i32
    %c0_i32_0 = arith.constant 0 : i32
    return %c0_i32, %arg0 : i32, i32
  }
}

</mosaic_0001>

<bundles_post_ra>
// kernel: conve_forward.1
= control target key start
LH: loop header
LB: loop body
LE: loop exit
PB: predicated region body
PF: predicated region fallthrough
CT: control target
= control target key end

     0   :  { %s1187_s21 = smov 0   ;;  %s1189_s22 = smov 0   ;;  %s1456_s0 = inlined_call_operand.vmem [shape: f32[8,64], index: 0, kind: input, shape index: {}]   ;;  %s1457_s1 = inlined_call_operand.vmem [shape: f32[64,128], index: 1, kind: input, shape index: {}]   ;;  %s1458_s2 = inlined_call_operand.vmem [shape: f32[1,128], index: 2, kind: input, shape index: {}]   ;;  %s1459_s3 = inlined_call_operand.vmem [shape: f32[128,32], index: 3, kind: input, shape index: {}]   ;;  %s1460_s4 = inlined_call_operand.vmem [shape: f32[1,32], index: 4, kind: input, shape index: {}]   ;;  %s1461_s5 = inlined_call_operand.vmem [shape: f32[32,2048], index: 5, kind: input, shape index: {}]   ;;  %s1462_s6 = inlined_call_operand.vmem [shape: f32[8,2048], index: 6, kind: output, shape index: {}]  }
   0x1   :  { %s1191_s23 = smov 0  }
   0x2 LB: > { %s959_s24 = sadd.s32 4294967295, %s1148_s23   ;;  %s1204_s25 = sadd.s32 1, %s1148_s23   ;;  %s1148_s23 = sphi %s1191_s23, %s1465_s23   ;;  %s1144_s22 = sphi %s1189_s22, %s1464_s22   ;;  %s1140_s21 = sphi %s1187_s21, %s1463_s21  }
   0x3   : > { %s125_s26 = ssub.s32 %s1148_s23, %s1204_s25  ;;  %s128_s27 = sadd.s32 1, %s1144_s22 }
   0x4   : > { %p126_p0 = scmp.eq.s32.totalorder %s125_s26, 0  ;;  %p135_p1 = scmp.ne.s32.totalorder %s1144_s22, %s1140_s21 }
   0x5   : > { %p136_p2 = scmp.eq.s32.totalorder %s1148_s23, 0  ;;  %p962_p4 = scmp.ge.s32.totalorder %s1148_s23, 2 }
   0x6   : > { %s1213_s28 = scalar_select %p126_p0, %s1144_s22, %s128_s27  }
   0x7   : > { %p137_p3 = por %p136_p2, %p135_p1  ;;  %202 = sbr.rel (%p962_p4) target bundleno = 32 (0x20), region = 36 }
   0xc   : > { %205 = sbr.rel (!%p137_p3) target bundleno = 32 (0x20), region = 40  ;;  %s207_s29 = sand.u32 (%p137_p3), 1, %s1144_s22  }
   0xd   : > { %s987_s30 = sshll.u32 (%p137_p3), %s1148_s23, 6  ;;  %s963_s7 = sshll.u32 (%p137_p3), %s207_s29, 8 }
   0xe   : > { %s1221_s10 = scalar_lea.vmem (%p137_p3), %s1461_s5, %s987_s30  ;;  %s1226_s11 = scalar_lea.vmem (%p137_p3), [#allocation2], %s963_s7 }
   0xf   : > { %v225_v0 = vld [vmem:[%s1221_s10] sm:$0xff] (%p137_p3)  ;;  %v227_v1 = vld [vmem:[%s1221_s10 + $0x8] sm:$0xff] (%p137_p3)  ;;  %v229_v2 = vld [vmem:[%s1221_s10 + $0x10] sm:$0xff] (%p137_p3) }
  0x10   : > { %226 = vst [vmem:[%s1226_s11] sm:$0xff] (%p137_p3), %v225_v0  ;;  %228 = vst [vmem:[%s1226_s11 + $0x8] sm:$0xff] (%p137_p3), %v227_v1  ;;  %v231_v3 = vld [vmem:[%s1221_s10 + $0x18] sm:$0xff] (%p137_p3)  ;;  %v233_v4 = vld [vmem:[%s1221_s10 + $0x20] sm:$0xff] (%p137_p3) }
  0x11   : > { %230 = vst [vmem:[%s1226_s11 + $0x10] sm:$0xff] %v229_v2  ;;  %v235_v5 = vld [vmem:[%s1221_s10 + $0x28] sm:$0xff]  ;;  %232 = vst [vmem:[%s1226_s11 + $0x18] sm:$0xff] %v231_v3  ;;  %v237_v6 = vld [vmem:[%s1221_s10 + $0x30] sm:$0xff] }
  0x12   : > { %234 = vst [vmem:[%s1226_s11 + $0x20] sm:$0xff] %v233_v4  ;;  %236 = vst [vmem:[%s1226_s11 + $0x28] sm:$0xff] %v235_v5  ;;  %v239_v7 = vld [vmem:[%s1221_s10 + $0x38] sm:$0xff]  ;;  %v241_v8 = vld [vmem:[%s1221_s10 + $0x80] sm:$0xff] }
  0x13   : > { %238 = vst [vmem:[%s1226_s11 + $0x30] sm:$0xff] %v237_v6  ;;  %240 = vst [vmem:[%s1226_s11 + $0x38] sm:$0xff] %v239_v7  ;;  %v243_v9 = vld [vmem:[%s1221_s10 + $0x88] sm:$0xff]  ;;  %v245_v10 = vld [vmem:[%s1221_s10 + $0x90] sm:$0xff] }
  0x14   : > { %242 = vst [vmem:[%s1226_s11 + $0x40] sm:$0xff] %v241_v8  ;;  %v247_v11 = vld [vmem:[%s1221_s10 + $0x98] sm:$0xff]  ;;  %244 = vst [vmem:[%s1226_s11 + $0x48] sm:$0xff] %v243_v9  ;;  %v249_v12 = vld [vmem:[%s1221_s10 + $0xa0] sm:$0xff] }
  0x15   : > { %246 = vst [vmem:[%s1226_s11 + $0x50] sm:$0xff] %v245_v10  ;;  %248 = vst [vmem:[%s1226_s11 + $0x58] sm:$0xff] %v247_v11  ;;  %v251_v13 = vld [vmem:[%s1221_s10 + $0xa8] sm:$0xff]  ;;  %v253_v14 = vld [vmem:[%s1221_s10 + $0xb0] sm:$0xff] }
  0x16   : > { %250 = vst [vmem:[%s1226_s11 + $0x60] sm:$0xff] %v249_v12  ;;  %252 = vst [vmem:[%s1226_s11 + $0x68] sm:$0xff] %v251_v13  ;;  %v255_v15 = vld [vmem:[%s1221_s10 + $0xb8] sm:$0xff]  ;;  %v257_v16 = vld [vmem:[%s1221_s10 + $0x100] sm:$0xff] }
  0x17   : > { %254 = vst [vmem:[%s1226_s11 + $0x70] sm:$0xff] %v253_v14  ;;  %v259_v17 = vld [vmem:[%s1221_s10 + $0x108] sm:$0xff]  ;;  %256 = vst [vmem:[%s1226_s11 + $0x78] sm:$0xff] %v255_v15  ;;  %v261_v18 = vld [vmem:[%s1221_s10 + $0x110] sm:$0xff] }
  0x18   : > { %258 = vst [vmem:[%s1226_s11 + $0x80] sm:$0xff] %v257_v16  ;;  %260 = vst [vmem:[%s1226_s11 + $0x88] sm:$0xff] %v259_v17  ;;  %v263_v19 = vld [vmem:[%s1221_s10 + $0x118] sm:$0xff]  ;;  %v265_v20 = vld [vmem:[%s1221_s10 + $0x120] sm:$0xff] }
  0x19   : > { %262 = vst [vmem:[%s1226_s11 + $0x90] sm:$0xff] %v261_v18  ;;  %264 = vst [vmem:[%s1226_s11 + $0x98] sm:$0xff] %v263_v19  ;;  %v267_v21 = vld [vmem:[%s1221_s10 + $0x128] sm:$0xff]  ;;  %v269_v22 = vld [vmem:[%s1221_s10 + $0x130] sm:$0xff] }
  0x1a   : > { %266 = vst [vmem:[%s1226_s11 + $0xa0] sm:$0xff] %v265_v20  ;;  %v271_v23 = vld [vmem:[%s1221_s10 + $0x138] sm:$0xff]  ;;  %268 = vst [vmem:[%s1226_s11 + $0xa8] sm:$0xff] %v267_v21  ;;  %v273_v24 = vld [vmem:[%s1221_s10 + $0x180] sm:$0xff] }
  0x1b   : > { %270 = vst [vmem:[%s1226_s11 + $0xb0] sm:$0xff] %v269_v22  ;;  %272 = vst [vmem:[%s1226_s11 + $0xb8] sm:$0xff] %v271_v23  ;;  %v275_v25 = vld [vmem:[%s1221_s10 + $0x188] sm:$0xff]  ;;  %v277_v26 = vld [vmem:[%s1221_s10 + $0x190] sm:$0xff] }
  0x1c   : > { %274 = vst [vmem:[%s1226_s11 + $0xc0] sm:$0xff] %v273_v24  ;;  %276 = vst [vmem:[%s1226_s11 + $0xc8] sm:$0xff] %v275_v25  ;;  %v279_v27 = vld [vmem:[%s1221_s10 + $0x198] sm:$0xff]  ;;  %v281_v28 = vld [vmem:[%s1221_s10 + $0x1a0] sm:$0xff] }
  0x1d   : > { %278 = vst [vmem:[%s1226_s11 + $0xd0] sm:$0xff] %v277_v26  ;;  %v283_v29 = vld [vmem:[%s1221_s10 + $0x1a8] sm:$0xff]  ;;  %280 = vst [vmem:[%s1226_s11 + $0xd8] sm:$0xff] %v279_v27  ;;  %v285_v30 = vld [vmem:[%s1221_s10 + $0x1b0] sm:$0xff] }
  0x1e   : > { %282 = vst [vmem:[%s1226_s11 + $0xe0] sm:$0xff] %v281_v28  ;;  %284 = vst [vmem:[%s1226_s11 + $0xe8] sm:$0xff] %v283_v29  ;;  %v287_v31 = vld [vmem:[%s1221_s10 + $0x1b8] sm:$0xff] }
  0x1f   : > { %286 = vst [vmem:[%s1226_s11 + $0xf0] sm:$0xff] %v285_v30  ;;  %288 = vst [vmem:[%s1226_s11 + $0xf8] sm:$0xff] %v287_v31 }
  0x20 PF: > { %p966_p5 = scmp.ge.s32.totalorder %s1148_s23, 1  ;;  %p293_p6 = scmp.lt.s32.totalorder %s1148_s23, 3 }
  0x22   : > { %p294_p7 = pnand %p966_p5, %p293_p6 }
  0x23   : > { %s300_s8 = sand.u32 (!%p294_p7), 1, %s1140_s21   ;;  %s968_s14 = sshll.u32 (!%p294_p7), %s959_s24, 3 }
  0x24   : > { %297 = sbr.rel (%p294_p7) target bundleno = 699 (0x2bb), region = 63  ;;  %s967_s9 = sshll.u32 (!%p294_p7), %s300_s8, 8 }
  0x25   : > { %s1394_s10 = scalar_lea.vmem (!%p294_p7), [#allocation2], %s967_s9  ;;  %p331_p8 = scmp.lt.s32.totalorder (!%p294_p7), %s968_s14, 15 }
  0x29   : > { %v344_v32 = vld [vmem:[%s1457_s1 + $0x38] sm:$0xff]  ;;  %v1150_v33 = vmov 0.0   ;;  %v343_v34 = vld [vmem:[%s1457_s1 + $0x30] sm:$0xff]  ;;  %vm1151_vm0 = vmmov 0   ;;  %v342_v35 = vld [vmem:[%s1457_s1 + $0x28] sm:$0xff]  ;;  %vm352_vm1 = vcmask 523264  }
  0x2a   : > { %1014 = vmatprep.subr.mxu0 %v1150_v33  ;;  %1030 = vmatprep.mubr.msk.f32.mxu0 %vm1151_vm0, %v1150_v33  ;;  %v442_v36 = vld [vmem:[%s1459_s3 + $0x78] sm:$0xff]  ;;  %v441_v37 = vld [vmem:[%s1459_s3 + $0x70] sm:$0xff]  ;;  %v341_v38 = vld [vmem:[%s1457_s1 + $0x20] sm:$0xff]  ;;  %vm553_vm2 = vcmask 261120   ;;  %s1467_s14 = smov (!%p331_p8, %s968_s14), 15 }
  0x2b   : > { %1015 = vmatpush3.msra.mxu0 %v344_v32  ;;  %1033 = vmatprep.subr.mxu1 %v1150_v33  ;;  %v440_v39 = vld [vmem:[%s1459_s3 + $0x68] sm:$0xff]  ;;  %v340_v40 = vld [vmem:[%s1457_s1 + $0x18] sm:$0xff]  ;;  %v439_v41 = vld [vmem:[%s1459_s3 + $0x60] sm:$0xff]  ;;  %s969_s23 = sshll.u32 %s1467_s14, 3 }
  0x2c   : > { %1016 = vmatprep.subr.mxu0 %v1150_v33  ;;  %1065 = vmatprep.mubr.msk.f32.mxu1 %vm1151_vm0, %v1150_v33  ;;  %v339_v42 = vld [vmem:[%s1457_s1 + $0x10] sm:$0xff]  ;;  %v438_v43 = vld [vmem:[%s1459_s3 + $0x58] sm:$0xff]  ;;  %v338_v44 = vld [vmem:[%s1457_s1 + $0x8] sm:$0xff]  ;;  %s334_s16 = scalar_lea.vmem %s1462_s6, %s969_s23 }
  0x2d   : > { %1017 = vmatpush3.msra.mxu0 %v343_v34  ;;  %1034 = vmatpush3.msra.mxu1 %v442_v36  ;;  %v437_v45 = vld [vmem:[%s1459_s3 + $0x50] sm:$0xff]  ;;  %v337_v46 = vld [vmem:[%s1457_s1] sm:$0xff]  ;;  %v436_v47 = vld [vmem:[%s1459_s3 + $0x48] sm:$0xff] }
  0x2e   : > { %1018 = vmatprep.subr.mxu0 %v1150_v33  ;;  %1035 = vmatprep.subr.mxu1 %v1150_v33  ;;  %v336_v48 = vld [vmem:[%s1456_s0] sm:$0xff]  ;;  %v434_v50 = vld [vmem:[%s1459_s3 + $0x38] sm:$0xff]  ;;  %v433_v51 = vld [vmem:[%s1459_s3 + $0x30] sm:$0xff] }
  0x2f   : > { %1019 = vmatpush3.msra.mxu0 %v342_v35  ;;  %1036 = vmatpush3.msra.mxu1 %v441_v37  ;;  %v435_v49 = vld [vmem:[%s1459_s3 + $0x40] sm:$0xff]  ;;  %v432_v52 = vld [vmem:[%s1459_s3 + $0x28] sm:$0xff]  ;;  %v430_v54 = vld [vmem:[%s1459_s3 + $0x18] sm:$0xff] }
  0x30   : > { %1020 = vmatprep.subr.mxu0 %v1150_v33  ;;  %1037 = vmatprep.subr.mxu1 %v1150_v33  ;;  %v431_v53 = vld [vmem:[%s1459_s3 + $0x20] sm:$0xff]  ;;  %v429_v55 = vld [vmem:[%s1459_s3 + $0x10] sm:$0xff]  ;;  %v428_v56 = vld [vmem:[%s1459_s3 + $0x8] sm:$0xff] }
  0x31   : > { %1021 = vmatpush3.msra.mxu0 %v341_v38  ;;  %1038 = vmatpush3.msra.mxu1 %v440_v39  ;;  %v427_v57 = vld [vmem:[%s1459_s3] sm:$0xff]  ;;  %v546_v58 = vld [vmem:[%s1394_s10 + $0xc8] sm:$0xff]  ;;  %v552_v60 = vld [vmem:[%s1394_s10 + $0xf8] sm:$0xff] }
  0x32   : > { %1022 = vmatprep.subr.mxu0 %v1150_v33  ;;  %1039 = vmatprep.subr.mxu1 %v1150_v33  ;;  %v545_v59 = vld [vmem:[%s1394_s10 + $0xc0] sm:$0xff]  ;;  %v538_v61 = vld [vmem:[%s1394_s10 + $0x88] sm:$0xff]  ;;  %v551_v4 = vld [vmem:[%s1394_s10 + $0xf0] sm:$0xff] }
  0x33   : > { %1023 = vmatpush3.msra.mxu0 %v340_v40  ;;  %1040 = vmatpush3.msra.mxu1 %v439_v41  ;;  %v537_v62 = vld [vmem:[%s1394_s10 + $0x80] sm:$0xff]  ;;  %v544_v5 = vld [vmem:[%s1394_s10 + $0xb8] sm:$0xff]  ;;  %v530_v6 = vld [vmem:[%s1394_s10 + $0x48] sm:$0xff] }
  0x34   : > { %1024 = vmatprep.subr.mxu0 %v1150_v33  ;;  %1041 = vmatprep.subr.mxu1 %v1150_v33  ;;  %v970_v63 = vld [vmem:[%s1458_s2] ss:$0 sm:$0xff]  ;;  %v543_v7 = vld [vmem:[%s1394_s10 + $0xb0] sm:$0xff]  ;;  %v536_v9 = vld [vmem:[%s1394_s10 + $0x78] sm:$0xff] }
  0x35   : > { %1025 = vmatpush3.msra.mxu0 %v339_v42  ;;  %1042 = vmatpush3.msra.mxu1 %v438_v43  ;;  %v529_v8 = vld [vmem:[%s1394_s10 + $0x40] sm:$0xff]  ;;  %v522_v10 = vld [vmem:[%s1394_s10 + $0x8] sm:$0xff]  ;;  %v535_v11 = vld [vmem:[%s1394_s10 + $0x70] sm:$0xff] }
  0x36   : > { %1026 = vmatprep.subr.mxu0 %v1150_v33  ;;  %1043 = vmatprep.subr.mxu1 %v1150_v33  ;;  %v521_v12 = vld [vmem:[%s1394_s10] sm:$0xff]  ;;  %v528_v13 = vld [vmem:[%s1394_s10 + $0x38] sm:$0xff]  ;;  %v527_v15 = vld [vmem:[%s1394_s10 + $0x30] sm:$0xff] }
  0x37   : > { %1027 = vmatpush3.msra.mxu0 %v338_v44  ;;  %1044 = vmatpush3.msra.mxu1 %v437_v45  ;;  %v548_v14 = vld [vmem:[%s1394_s10 + $0xd8] sm:$0xff]  ;;  %v972_v16 = vld [vmem:[%s1460_s4] ss:$0 sm:$0xff]  ;;  %v547_v21 = vld [vmem:[%s1394_s10 + $0xd0] sm:$0xff] }
  0x38   : > { %1028 = vmatprep.subr.mxu0 %v1150_v33  ;;  %1045 = vmatprep.subr.mxu1 %v1150_v33  ;;  %v540_v22 = vld [vmem:[%s1394_s10 + $0x98] sm:$0xff]  ;;  %v539_v23 = vld [vmem:[%s1394_s10 + $0x90] sm:$0xff]  ;;  %v550_v28 = vld [vmem:[%s1394_s10 + $0xe8] sm:$0xff] }
  0x39   : > { %1029 = vmatpush3.msra.mxu0 %v337_v46  ;;  %1046 = vmatpush3.msra.mxu1 %v436_v47  ;;  %v532_v24 = vld [vmem:[%s1394_s10 + $0x58] sm:$0xff]  ;;  %v531_v25 = vld [vmem:[%s1394_s10 + $0x50] sm:$0xff]  ;;  %v549_v29 = vld [vmem:[%s1394_s10 + $0xe0] sm:$0xff] }
  0x3a   : > { %1031 = vmatmul.mubr.msk.f32.vlgmr.msra.gmra.mxu0 %vm352_vm1, %v336_v48  ;;  %1047 = vmatprep.subr.mxu1 %v1150_v33  ;;  %v524_v26 = vld [vmem:[%s1394_s10 + $0x18] sm:$0xff]  ;;  %v523_v27 = vld [vmem:[%s1394_s10 + $0x10] sm:$0xff]  ;;  %v542_v30 = vld [vmem:[%s1394_s10 + $0xa8] sm:$0xff] }
  0x3b   : > { %1048 = vmatpush3.msra.mxu1 %v435_v49  ;;  %621 = vmatprep.mubr.f32.mxu0 %v1150_v33  ;;  %v541_v31 = vld [vmem:[%s1394_s10 + $0xa0] sm:$0xff]  ;;  %v534_v32 = vld [vmem:[%s1394_s10 + $0x68] sm:$0xff] }
  0x3c   : > { %1049 = vmatprep.subr.mxu1 %v1150_v33  ;;  %581 = vmatprep.subr.mxu0 %v546_v58  ;;  %v533_v34 = vld [vmem:[%s1394_s10 + $0x60] sm:$0xff]  ;;  %v526_v35 = vld [vmem:[%s1394_s10 + $0x28] sm:$0xff] }
  0x3d   : > { %1050 = vmatpush3.msra.mxu1 %v434_v50  ;;  %582 = vmatpush1.msra.mxu0 %v545_v59  ;;  %v525_v36 = vld [vmem:[%s1394_s10 + $0x20] sm:$0xff] }
  0x3e   : > { %1051 = vmatprep.subr.mxu1 %v1150_v33  ;;  %583 = vmatprep.subr.mxu0 %v538_v61 }
  0x3f   : > { %1052 = vmatpush3.msra.mxu1 %v433_v51  ;;  %584 = vmatpush1.msra.mxu0 %v537_v62 }
  0x40   : > { %1053 = vmatprep.subr.mxu1 %v1150_v33  ;;  %585 = vmatprep.subr.mxu0 %v530_v6 }
  0x41   : > { %1054 = vmatpush3.msra.mxu1 %v432_v52  ;;  %586 = vmatpush1.msra.mxu0 %v529_v8 }
  0x42   : > { %1055 = vmatprep.subr.mxu1 %v1150_v33  ;;  %587 = vmatprep.subr.mxu0 %v522_v10 }
  0x43   : > { %1056 = vmatpush3.msra.mxu1 %v431_v53  ;;  %588 = vmatpush1.msra.mxu0 %v521_v12 }
  0x44   : > { %1057 = vmatprep.subr.mxu1 %v1150_v33  ;;  %652 = vmatprep.subr.mxu0 %v548_v14 }
  0x45   : > { %1058 = vmatpush3.msra.mxu1 %v430_v54 }
  0x46   : > { %1059 = vmatprep.subr.mxu1 %v1150_v33 }
  0x47   : > { %1060 = vmatpush3.msra.mxu1 %v429_v55 }
  0x48   : > { %1061 = vmatprep.subr.mxu1 %v1150_v33 }
  0x49   : > { %1062 = vmatpush3.msra.mxu1 %v428_v56 }
  0x4a   : > { %1063 = vmatprep.subr.mxu1 %v1150_v33 }
  0x4b   : > { %1064 = vmatpush3.msra.mxu1 %v427_v57 }
  0x4c   : > { %794 = vmatprep.subr.mxu1 %v552_v60 }
  0xfa   : > { %v422_v0 = vpop.f32.mrf.mxu0 }
  0xfb   : > { %v423_v1 = vadd.f32 %v970_v63, %v422_v0 }
  0xfc   : > { %v1032_v2 = vpop.f32.mrf.mxu0 }
  0xfd   : > { %v426_v3 = vmax.f32 %v423_v1, 0.0 }
  0xff   : > { %1066 = vmatmul.mubr.f32.vlgmr.msra.gmra.mxu1 %v426_v3 }
 0x100   : > { %795 = vmatpush1.msra.mxu1 %v551_v4  ;;  %834 = vmatprep.mubr.f32.mxu1 %v1150_v33 }
 0x101   : > { %796 = vmatprep.subr.mxu1 %v544_v5 }
 0x102   : > { %797 = vmatpush1.msra.mxu1 %v543_v7 }
 0x103   : > { %798 = vmatprep.subr.mxu1 %v536_v9 }
 0x104   : > { %799 = vmatpush1.msra.mxu1 %v535_v11 }
 0x105   : > { %800 = vmatprep.subr.mxu1 %v528_v13 }
 0x106   : > { %801 = vmatpush1.msra.mxu1 %v527_v15 }
 0x1bf   : > { %v516_v17 = vpop.f32.mrf.mxu1 }
 0x1c0   : > { %v517_v18 = vadd.f32 %v972_v16, %v516_v17 }
 0x1c1   : > { %v1067_v19 = vpop.f32.mrf.mxu1 }
 0x1c2   : > { %v520_v20 = vmax.f32 %v517_v18, 0.0 }
 0x1c4   : > { %973 = vmatmul.mubr.msk.f32.vlgmr.msra.gmra.mxu0 %vm553_vm2, %v520_v20  ;;  %976 = vmatmul.mubr.msk.f32.vlgmr.msra.gmra.mxu1 %vm553_vm2, %v520_v20 }
 0x1c5   : > { %653 = vmatpush1.msra.mxu0 %v547_v21  ;;  %692 = vmatprep.mubr.f32.mxu0 %v1150_v33 }
 0x1c6   : > { %654 = vmatprep.subr.mxu0 %v540_v22 }
 0x1c7   : > { %655 = vmatpush1.msra.mxu0 %v539_v23 }
 0x1c8   : > { %656 = vmatprep.subr.mxu0 %v532_v24 }
 0x1c9   : > { %657 = vmatpush1.msra.mxu0 %v531_v25 }
 0x1ca   : > { %658 = vmatprep.subr.mxu0 %v524_v26 }
 0x1cb   : > { %659 = vmatpush1.msra.mxu0 %v523_v27 }
 0x1cc   : > { %974 = vmatmul.mubr.msk.f32.vlgmr.msra.gmra.mxu0 %vm553_vm2, %v520_v20  ;;  %723 = vmatprep.subr.mxu0 %v550_v28 }
 0x1cd   : > { %724 = vmatpush1.msra.mxu0 %v549_v29  ;;  %763 = vmatprep.mubr.f32.mxu0 %v1150_v33 }
 0x1ce   : > { %725 = vmatprep.subr.mxu0 %v542_v30 }
 0x1cf   : > { %726 = vmatpush1.msra.mxu0 %v541_v31 }
 0x1d0   : > { %727 = vmatprep.subr.mxu0 %v534_v32 }
 0x1d1   : > { %728 = vmatpush1.msra.mxu0 %v533_v34 }
 0x1d2   : > { %729 = vmatprep.subr.mxu0 %v526_v35 }
 0x1d3   : > { %730 = vmatpush1.msra.mxu0 %v525_v36 }
 0x1d4   : > { %975 = vmatmul.mubr.msk.f32.vlgmr.msra.gmra.mxu0 %vm553_vm2, %v520_v20 }
 0x284   : > { %v623_v37 = vpop.f32.mrf.mxu0  ;;  %v836_v38 = vpop.f32.mrf.mxu1 }
 0x285   : > { %v977_v39 = vmul.f32 -1.442695, %v623_v37  ;;  %v983_v40 = vmul.f32 -1.442695, %v836_v38 }
 0x286   : > { %v625_v41 = vpop.f32.mrf.mxu0  ;;  %v838_v42 = vpop.f32.mrf.mxu1 }
 0x287   : > { %1094 = vpow2.f32 %v977_v39  ;;  %v978_v33 = vmul.f32 -1.442695, %v625_v41  ;;  %v984_v43 = vmul.f32 -1.442695, %v838_v42 }
 0x288   : > { %1096 = vpow2.f32 %v983_v40 }
 0x289   : > { %1098 = vpow2.f32 %v978_v33 }
 0x28a   : > { %1100 = vpow2.f32 %v984_v43 }
 0x28c   : > { %v694_v44 = vpop.f32.mrf.mxu0 }
 0x28d   : > { %v979_v45 = vmul.f32 -1.442695, %v694_v44 }
 0x28e   : > { %v696_v46 = vpop.f32.mrf.mxu0 }
 0x28f   : > { %1102 = vpow2.f32 %v979_v45  ;;  %v980_v47 = vmul.f32 -1.442695, %v696_v46 }
 0x291   : > { %1104 = vpow2.f32 %v980_v47 }
 0x294   : > { %v1095_v48 = vpop.eup %1094  ;;  %v765_v49 = vpop.f32.mrf.mxu0 }
 0x295   : > { %v1097_v50 = vpop.eup %1096  ;;  %v865_v51 = vadd.f32 1.0, %v1095_v48  ;;  %v981_v57 = vmul.f32 -1.442695, %v765_v49 }
 0x296   : > { %v1099_v52 = vpop.eup %1098  ;;  %v871_v53 = vadd.f32 1.0, %v1097_v50  ;;  %v767_v54 = vpop.f32.mrf.mxu0 }
 0x297   : > { %v1101_v55 = vpop.eup %1100  ;;  %1106 = vrcp.f32 %v865_v51  ;;  %v866_v56 = vadd.f32 1.0, %v1099_v52  ;;  %v982_v59 = vmul.f32 -1.442695, %v767_v54 }
 0x298   : > { %1108 = vrcp.f32 %v871_v53  ;;  %v872_v58 = vadd.f32 1.0, %v1101_v55 }
 0x299   : > { %1110 = vrcp.f32 %v866_v56 }
 0x29a   : > { %1112 = vrcp.f32 %v872_v58 }
 0x29b   : > { %1114 = vpow2.f32 %v981_v57 }
 0x29c   : > { %v1103_v60 = vpop.eup %1102  ;;  %1116 = vpow2.f32 %v982_v59 }
 0x29d   : > { %v867_v61 = vadd.f32 1.0, %v1103_v60 }
 0x29e   : > { %v1105_v62 = vpop.eup %1104 }
 0x29f   : > { %1118 = vrcp.f32 %v867_v61  ;;  %v868_v63 = vadd.f32 1.0, %v1105_v62 }
 0x2a1   : > { %1120 = vrcp.f32 %v868_v63 }
 0x2a4   : > { %v1107_v0 = vpop.eup %1106 }
 0x2a5   : > { %v1109_v1 = vpop.eup %1108  ;;  %889 = vst [vmem:[%s334_s16] sm:$0xff] %v1107_v0 }
 0x2a6   : > { %v1111_v2 = vpop.eup %1110  ;;  %895 = vst [vmem:[%s334_s16 + $0x30] sm:$0xff] %v1109_v1 }
 0x2a7   : > { %v1113_v3 = vpop.eup %1112  ;;  %890 = vst [vmem:[%s334_s16 + $0x8] sm:$0xff] %v1111_v2 }
 0x2a8   : > { %v1115_v4 = vpop.eup %1114  ;;  %896 = vst [vmem:[%s334_s16 + $0x38] sm:$0xff] %v1113_v3 }
 0x2a9   : > { %v1117_v5 = vpop.eup %1116  ;;  %v869_v6 = vadd.f32 1.0, %v1115_v4 }
 0x2aa   : > { %v870_v7 = vadd.f32 1.0, %v1117_v5 }
 0x2ab   : > { %1122 = vrcp.f32 %v869_v6 }
 0x2ac   : > { %v1119_v8 = vpop.eup %1118  ;;  %1124 = vrcp.f32 %v870_v7 }
 0x2ad   : > { %891 = vst [vmem:[%s334_s16 + $0x10] sm:$0xff] %v1119_v8 }
 0x2ae   : > { %v1121_v9 = vpop.eup %1120 }
 0x2af   : > { %892 = vst [vmem:[%s334_s16 + $0x18] sm:$0xff] %v1121_v9 }
 0x2b8   : > { %v1123_v10 = vpop.eup %1122 }
 0x2b9   : > { %v1125_v11 = vpop.eup %1124  ;;  %893 = vst [vmem:[%s334_s16 + $0x20] sm:$0xff] %v1123_v10 }
 0x2ba   : > { %894 = vst [vmem:[%s334_s16 + $0x28] sm:$0xff] %v1125_v11 }
 0x2bb PF: > { %p13_p9 = scmp.ge.s32.totalorder %s1204_s25, 4   ;;  %s1463_s21 = smov %s1144_s22 }
 0x2bc   : > { %s1464_s22 = smov %s1213_s28  ;;  %s1465_s23 = smov %s1204_s25 }
 0x2bd   :  { %15 = sbr.rel (!%p13_p9) target bundleno = 2 (0x2), region = 102 }

</bundles_post_ra>
